<compile_context>
chip_gen: v7x
topology: tpu7x:2x2x1
jax: 0.10.0
libtpu: 0.0.40
codegen_flags: <defaults>
</compile_context>

<pallas_src>
import functools

import jax
import jax.numpy as jnp
from jax import lax
from jax.experimental import pallas as pl
from jax.experimental.pallas import tpu as pltpu

MXU_DTYPE = jnp.bfloat16          # MXU operand dtype; accumulation stays f32


def _round_up(x, m):
    return (x + m - 1) // m * m


# ------------------- tiled matmul (+bias, +SiLU, +residual) -------------------

def _mm_kernel(a_ref, b_ref, bias_ref, o_ref, acc_ref, *, nk, activation):
    @pl.when(pl.program_id(2) == 0)
    def _():
        acc_ref[...] = jnp.broadcast_to(bias_ref[...], acc_ref.shape)

    acc_ref[...] += jnp.dot(a_ref[...], b_ref[...],
                            preferred_element_type=jnp.float32)

    @pl.when(pl.program_id(2) == nk - 1)
    def _():
        y = acc_ref[...]
        if activation == "silu":
            y = y * jax.nn.sigmoid(y)
        o_ref[...] = y.astype(o_ref.dtype)


def _mm_res_kernel(a_ref, b_ref, bias_ref, res_ref, o_ref, acc_ref, *, nk,
                   activation):
    @pl.when(pl.program_id(2) == 0)
    def _():
        acc_ref[...] = jnp.broadcast_to(bias_ref[...], acc_ref.shape)

    acc_ref[...] += jnp.dot(a_ref[...], b_ref[...],
                            preferred_element_type=jnp.float32)

    @pl.when(pl.program_id(2) == nk - 1)
    def _():
        y = acc_ref[...]
        if activation == "silu":
            y = y * jax.nn.sigmoid(y)
        y = y + res_ref[...].astype(jnp.float32)
        o_ref[...] = y.astype(o_ref.dtype)


def matmul(a, b, bias=None, *, activation=None, residual=None,
           out_dtype=jnp.float32, tm_cap=256, tn_cap=256, tk_cap=512):
    """(M, K) @ (K, N) + bias [+ SiLU] [+ residual]; bf16 MXU operands, f32 acc."""
    M, K = a.shape
    K2, N = b.shape
    assert K == K2
    a = a.astype(MXU_DTYPE)
    b = b.astype(MXU_DTYPE)

    tm = M if M <= tm_cap else tm_cap
    tn = N if N <= tn_cap else tn_cap
    # K must be zero-padded (garbage along the contraction would corrupt outputs);
    # M/N edge blocks use a cdiv grid (out-of-bounds writes are masked by Pallas).
    if K <= tk_cap:
        tk, Kp = K, K
    else:
        tk, Kp = tk_cap, _round_up(K, tk_cap)
    if Kp != K:
        a = jnp.pad(a, ((0, 0), (0, Kp - K)))
        b = jnp.pad(b, ((0, Kp - K), (0, 0)))
    nk = Kp // tk

    if bias is None:
        bias2 = jnp.zeros((1, N), jnp.float32)
    else:
        bias2 = bias.reshape(1, N).astype(jnp.float32)

    in_specs = [pl.BlockSpec((tm, tk), lambda i, j, k: (i, k)),
                pl.BlockSpec((tk, tn), lambda i, j, k: (k, j)),
                pl.BlockSpec((1, tn), lambda i, j, k: (0, j))]
    args = [a, b, bias2]
    if residual is not None:
        res = residual.reshape(M, N)
        in_specs.append(pl.BlockSpec((tm, tn), lambda i, j, k: (i, j)))
        args.append(res)
        kernel = functools.partial(_mm_res_kernel, nk=nk, activation=activation)
    else:
        kernel = functools.partial(_mm_kernel, nk=nk, activation=activation)

    return pl.pallas_call(
        kernel,
        grid=(pl.cdiv(M, tm), pl.cdiv(N, tn), nk),
        in_specs=in_specs,
        out_specs=pl.BlockSpec((tm, tn), lambda i, j, k: (i, j)),
        out_shape=jax.ShapeDtypeStruct((M, N), out_dtype),
        scratch_shapes=[pltpu.VMEM((tm, tn), jnp.float32)],
        compiler_params=pltpu.CompilerParams(
            dimension_semantics=("parallel", "parallel", "arbitrary"),
            vmem_limit_bytes=64 * 1024 * 1024),
    )(*args)


# ----------------------------- SiLU (time embed) -----------------------------

def _silu_kernel(x_ref, o_ref):
    x = x_ref[...]
    o_ref[...] = x * jax.nn.sigmoid(x)


def silu(x):
    return pl.pallas_call(
        _silu_kernel, out_shape=jax.ShapeDtypeStruct(x.shape, jnp.float32)
    )(x.astype(jnp.float32))


# -------- fused ConditionalGroupNorm (+SiLU, +1x1 conv, +residual add) --------

def _cgn_kernel(*refs, hw, c, g, eps, pre_silu, post_silu, has_proj, has_res):
    it = iter(refs)
    x_ref = next(it)
    ss_ref = next(it)
    oh_ref = next(it)
    oht_ref = next(it)
    pw_ref = next(it) if has_proj else None
    pb_ref = next(it) if has_proj else None
    res_ref = next(it) if has_res else None
    o_ref = next(it)

    x = x_ref[...].reshape(hw, c)                 # f32 activations
    ss = ss_ref[...].reshape(1, 2 * c)            # hoisted context-MLP output
    scale, shift = ss[:, :c], ss[:, c:]

    oh = oh_ref[...]                              # (C, G) channel -> group one-hot
    oht = oht_ref[...]                            # (G, C)
    n = float(hw * (c // g))
    gmean = jnp.dot(jnp.sum(x, axis=0, keepdims=True), oh,
                    preferred_element_type=jnp.float32) / n           # (1, G)
    mean_c = jnp.dot(gmean, oht, preferred_element_type=jnp.float32)  # (1, C)
    xc = x - mean_c                               # centered (avoids E[x^2]-E[x]^2 cancel)
    gvar = jnp.dot(jnp.sum(xc * xc, axis=0, keepdims=True), oh,
                   preferred_element_type=jnp.float32) / n            # (1, G) biased var
    inv_c = jnp.dot(lax.rsqrt(gvar + eps), oht,
                    preferred_element_type=jnp.float32)               # (1, C)

    y = xc * inv_c * (scale + 1.0) + shift
    if pre_silu:
        y = y * jax.nn.sigmoid(y)
    if has_proj:
        y = jnp.dot(y.astype(MXU_DTYPE), pw_ref[...],
                    preferred_element_type=jnp.float32) + pb_ref[...]
        if post_silu:
            y = y * jax.nn.sigmoid(y)
    if has_res:
        y = y + res_ref[...].reshape(y.shape).astype(jnp.float32)
    o_ref[...] = y.reshape(o_ref.shape).astype(o_ref.dtype)


def cgn_apply(x, t_act, p, groups, *, pre_silu=False, proj_w=None, proj_b=None,
              post_silu=False, residual=None, out_dtype=jnp.float32, eps=1e-5):
    """GroupNorm(affine=False) -> *(scale+1)+shift -> [SiLU] -> [1x1 conv -> SiLU] [+res]."""
    B, H, W, C = x.shape
    G = groups
    # Context MLP hoisted out of the per-batch kernel: one tiny tiled matmul for all B.
    ss = matmul(t_act, p['w_ss'], p['b_ss']).reshape(B, 1, 2 * C)

    oh = (jnp.arange(C)[:, None] // (C // G) == jnp.arange(G)[None, :]
          ).astype(jnp.float32)
    oht = oh.T

    has_proj = proj_w is not None
    has_res = residual is not None
    Cout = proj_w.shape[-1] if has_proj else C

    args = [x.astype(jnp.float32), ss, oh, oht]
    in_specs = [
        pl.BlockSpec((1, H, W, C), lambda b: (b, 0, 0, 0)),
        pl.BlockSpec((1, 1, 2 * C), lambda b: (b, 0, 0)),
        pl.BlockSpec((C, G), lambda b: (0, 0)),
        pl.BlockSpec((G, C), lambda b: (0, 0)),
    ]
    if has_proj:
        pb = (jnp.zeros((1, Cout), jnp.float32) if proj_b is None
              else proj_b.reshape(1, Cout).astype(jnp.float32))
        args += [proj_w.astype(MXU_DTYPE), pb]
        in_specs += [pl.BlockSpec((C, Cout), lambda b: (0, 0)),
                     pl.BlockSpec((1, Cout), lambda b: (0, 0))]
    if has_res:
        args.append(residual)
        in_specs.append(pl.BlockSpec((1, H, W, Cout), lambda b: (b, 0, 0, 0)))

    kernel = functools.partial(_cgn_kernel, hw=H * W, c=C, g=G, eps=eps,
                               pre_silu=pre_silu, post_silu=post_silu,
                               has_proj=has_proj, has_res=has_res)
    # TODO(synk): spatially tile (grid (B, HW/tile) with carried sum/sumsq) for
    # full-resolution inputs and v7x's smaller VMEM.
    return pl.pallas_call(
        kernel,
        grid=(B,),
        in_specs=in_specs,
        out_specs=pl.BlockSpec((1, H, W, Cout), lambda b: (b, 0, 0, 0)),
        out_shape=jax.ShapeDtypeStruct((B, H, W, Cout), out_dtype),
        compiler_params=pltpu.CompilerParams(dimension_semantics=("parallel",)),
    )(*args)


# ------------------------------- convolutions --------------------------------

def _conv3x3_kernel(xp_ref, w_ref, b_ref, o_ref, acc_ref, *, H, W, Cout):
    # 9-tap accumulation into a bias-initialized VMEM scratch; no im2col in HBM.
    xp = xp_ref[0]                                    # (H+2, W+2, C) bf16
    acc_ref[...] = jnp.broadcast_to(b_ref[...], acc_ref.shape)
    for di in range(3):
        for dj in range(3):
            patch = xp[di:di + H, dj:dj + W, :].reshape(H * W, -1)
            acc_ref[...] += jnp.dot(patch, w_ref[di, dj],
                                    preferred_element_type=jnp.float32)
    o_ref[0] = acc_ref[...].reshape(H, W, Cout).astype(o_ref.dtype)


def conv3x3(x, w, b):
    # nn.Conv2d(kernel_size=3, padding=1); one grid step per batch element.
    # TODO(synk): tile spatially (row bands) / use pltpu.roll tap shifts for
    # full-resolution inputs (VMEM budget, relayout-free taps).
    B, H, W, C = x.shape
    Cout = w.shape[-1]
    xp = jnp.pad(x.astype(MXU_DTYPE), ((0, 0), (1, 1), (1, 1), (0, 0)))
    kernel = functools.partial(_conv3x3_kernel, H=H, W=W, Cout=Cout)
    return pl.pallas_call(
        kernel,
        grid=(B,),
        in_specs=[pl.BlockSpec((1, H + 2, W + 2, C), lambda bb: (bb, 0, 0, 0)),
                  pl.BlockSpec((3, 3, C, Cout), lambda bb: (0, 0, 0, 0)),
                  pl.BlockSpec((1, Cout), lambda bb: (0, 0))],
        out_specs=pl.BlockSpec((1, H, W, Cout), lambda bb: (bb, 0, 0, 0)),
        out_shape=jax.ShapeDtypeStruct((B, H, W, Cout), jnp.float32),
        scratch_shapes=[pltpu.VMEM((H * W, Cout), jnp.float32)],
        compiler_params=pltpu.CompilerParams(dimension_semantics=("parallel",)),
    )(xp, w.astype(MXU_DTYPE), b.reshape(1, Cout).astype(jnp.float32))


def conv2x2_s2(x, w, b, residual=None):
    # nn.Conv2d(kernel_size=2, stride=2): bf16 space-to-depth + tiled matmul
    # (+ optional fused residual add for the ResNet shortcut path).
    # TODO(synk): gather the 4 strided taps in-kernel (BlockSpec/DMA) to remove
    # the space-to-depth HBM relayout at production resolutions.
    B, H, W, C = x.shape
    Cout = w.shape[-1]
    patches = (x.astype(MXU_DTYPE)
                .reshape(B, H // 2, 2, W // 2, 2, C)
                .transpose(0, 1, 3, 2, 4, 5)
                .reshape(B * (H // 2) * (W // 2), 4 * C))
    res = None if residual is None else residual.reshape(-1, Cout)
    out = matmul(patches, w.reshape(4 * C, Cout), b, residual=res)
    return out.reshape(B, H // 2, W // 2, Cout)


# --------------------------------- attention ----------------------------------

def _mha_heads(q, k, v, nh, d):
    # Per-head attention; 1/sqrt(d) already folded into the query weights.
    # Output is concatenated lane-dense as (S, nh*d).
    outs = []
    for h in range(nh):
        qh = q[:, h * d:(h + 1) * d]
        kh = k[:, h * d:(h + 1) * d]
        vh = v[:, h * d:(h + 1) * d]
        s = lax.dot_general(qh, kh, (((1,), (1,)), ((), ())),
                            preferred_element_type=jnp.float32)       # (S, T)
        m = jnp.max(s, axis=-1, keepdims=True)
        p = jnp.exp(s - m)
        p = p * pl.reciprocal(jnp.sum(p, axis=-1, keepdims=True), approx=True)
        outs.append(jnp.dot(p.astype(vh.dtype), vh,
                            preferred_element_type=jnp.float32))       # (S, d)
    return jnp.concatenate(outs, axis=-1)


def _self_attn_kernel(qkv_ref, o_ref, *, nh, d, c):
    qkv = qkv_ref[0]                                   # (S, 3C) bf16
    out = _mha_heads(qkv[:, :c], qkv[:, c:2 * c], qkv[:, 2 * c:], nh, d)
    o_ref[0] = out.astype(o_ref.dtype)


def _cross_attn_kernel(q_ref, kv_ref, o_ref, *, nh, d, c):
    q = q_ref[0]                                       # (S, C) bf16
    kv = kv_ref[0]                                     # (T, 2C) bf16
    out = _mha_heads(q, kv[:, :c], kv[:, c:], nh, d)
    o_ref[0] = out.astype(o_ref.dtype)


def attention_block_fwd(p, x, t_act, context, groups, head_dim):
    # TODO(synk): flash-style KV tiling (online softmax, grid over S blocks) is
    # required for full-resolution S = H*W; whole-sequence scores only at demo sizes.
    B, H, W, C = x.shape
    S = H * W
    nH = C // head_dim

    norm = cgn_apply(x, t_act, p['in_norm'], groups, out_dtype=MXU_DTYPE)
    xseq = norm.reshape(B * S, C)

    if context is None:
        # self-attention: pre-concatenated, pre-scaled QKV weights -> one wide matmul
        qkv = matmul(xseq, p['attn']['w_qkv'],
                     out_dtype=MXU_DTYPE).reshape(B, S, 3 * C)
        attn = pl.pallas_call(
            functools.partial(_self_attn_kernel, nh=nH, d=head_dim, c=C),
            grid=(B,),
            in_specs=[pl.BlockSpec((1, S, 3 * C), lambda b: (b, 0, 0))],
            out_specs=pl.BlockSpec((1, S, C), lambda b: (b, 0, 0)),
            out_shape=jax.ShapeDtypeStruct((B, S, C), MXU_DTYPE),
            compiler_params=pltpu.CompilerParams(dimension_semantics=("parallel",)),
        )(qkv)
    else:
        T = context.shape[1]
        cseq = context.reshape(B * T, -1)
        q = matmul(xseq, p['attn']['w_q'], out_dtype=MXU_DTYPE).reshape(B, S, C)
        kv = matmul(cseq, p['attn']['w_kv'], out_dtype=MXU_DTYPE).reshape(B, T, 2 * C)
        attn = pl.pallas_call(
            functools.partial(_cross_attn_kernel, nh=nH, d=head_dim, c=C),
            grid=(B,),
            in_specs=[pl.BlockSpec((1, S, C), lambda b: (b, 0, 0)),
                      pl.BlockSpec((1, T, 2 * C), lambda b: (b, 0, 0))],
            out_specs=pl.BlockSpec((1, S, C), lambda b: (b, 0, 0)),
            out_shape=jax.ShapeDtypeStruct((B, S, C), MXU_DTYPE),
            compiler_params=pltpu.CompilerParams(dimension_semantics=("parallel",)),
        )(q, kv)

    # output projection fused with the residual add (x = x + attn_out)
    x2 = matmul(attn.reshape(B * S, C), p['attn']['to_out'],
                residual=x.reshape(B * S, C)).reshape(B, H, W, C)

    # out_norm + FF: GN -> conv1x1 (no bias) -> SiLU fused in one kernel,
    # second conv1x1 fused with the residual add (x = x + ff_out).
    hidden = cgn_apply(x2, t_act, p['out_norm'], groups,
                       proj_w=p['ff_w1'], post_silu=True, out_dtype=MXU_DTYPE)
    Hc = hidden.shape[-1]
    out = matmul(hidden.reshape(B * S, Hc), p['ff_w2'],
                 residual=x2.reshape(B * S, C)).reshape(B, H, W, C)
    return out


# ----------------------------- module forwards --------------------------------

def block_fwd(p, x, t_act, groups, kernel_size, down, residual=None):
    # Block: GN -> SiLU -> (up_sample: Identity) -> conv -> [down_sample]
    fused_res = False
    if kernel_size == 1:
        res = None if down else residual
        x = cgn_apply(x, t_act, p['norm'], groups, pre_silu=True,
                      proj_w=p['proj_w'], proj_b=p['proj_b'], residual=res)
        fused_res = res is not None
    else:
        h = cgn_apply(x, t_act, p['norm'], groups, pre_silu=True,
                      out_dtype=MXU_DTYPE)
        x = conv3x3(h, p['proj_w'], p['proj_b'])
    if down:
        x = conv2x2_s2(x, p['down_w'], p['down_b'])
    if residual is not None and not fused_res:
        x = x + residual
    return x


def resnet_block_fwd(p, x, t_act, groups):
    has_proj = 'short_proj_w' in p
    has_down = 'short_down_w' in p
    identity_shortcut = not has_proj and not has_down
    fuse_identity = (identity_shortcut and p['kernel_sizes'][-1] == 1
                     and (p['up_resolutions'][-1] is not False))

    blocks = list(zip(p['blocks'], p['kernel_sizes'], p['up_resolutions']))
    out = x
    for idx, (bp, ks, up) in enumerate(blocks):
        is_last = idx == len(blocks) - 1
        res = x if (fuse_identity and is_last) else None
        out = block_fwd(bp, out, t_act, groups, ks, down=(up is False),
                        residual=res)
    if identity_shortcut:
        return out if fuse_identity else x + out

    sc = x
    if has_proj:
        B, H, W, Cin = sc.shape
        Cout = p['short_proj_w'].shape[-1]
        res = None if has_down else out.reshape(-1, Cout)
        sc = matmul(sc.reshape(-1, Cin), p['short_proj_w'], p['short_proj_b'],
                    residual=res).reshape(B, H, W, Cout)
        if not has_down:
            return sc                      # residual fused into the matmul
    return conv2x2_s2(sc, p['short_down_w'], p['short_down_b'], residual=out)


def downsample_block_fwd(params, x, time_embed, context, cfg):
    groups, head_dim = cfg['groups'], cfg['head_dim']
    t_act = silu(time_embed)               # SiLU(time_embed) computed once, reused everywhere
    if params['self_attn'] is not None:
        x = attention_block_fwd(params['self_attn'], x, t_act, None,
                                groups, head_dim)
    for pair in params['pairs']:
        x = resnet_block_fwd(pair['in_res'], x, t_act, groups)
        if pair['attn'] is not None:
            x = attention_block_fwd(pair['attn'], x, t_act, context,
                                    groups, head_dim)
        x = resnet_block_fwd(pair['out_res'], x, t_act, groups)
    return x


# ------------------------------ parameter init --------------------------------

class KeyGen:
    def __init__(self, seed):
        self._key = jax.random.PRNGKey(seed)

    def __call__(self):
        self._key, sub = jax.random.split(self._key)
        return sub


def _w(kg, shape, scale=0.05, dtype=jnp.float32):
    return (jax.random.normal(kg(), shape, jnp.float32) * scale).astype(dtype)


def init_cgn(kg, channels, time_dim):
    # NOTE: reference __init__ zero-inits this MLP; small random values are used so
    # the conditioning path is exercised.  scale||shift weights are concatenated.
    return {'w_ss': _w(kg, (time_dim, 2 * channels), dtype=MXU_DTYPE),
            'b_ss': _w(kg, (2 * channels,))}


def init_attention(kg, in_ch, out_ch, ctx_dim, head_dim):
    scale = head_dim ** -0.5
    p = {'to_out': _w(kg, (out_ch, out_ch), dtype=MXU_DTYPE)}
    if ctx_dim is None:
        # self-attention: pre-concatenated QKV, 1/sqrt(d) folded into Q at init
        wq = _w(kg, (in_ch, out_ch)) * scale
        wk = _w(kg, (in_ch, out_ch))
        wv = _w(kg, (in_ch, out_ch))
        p['w_qkv'] = jnp.concatenate([wq, wk, wv], axis=1).astype(MXU_DTYPE)
    else:
        p['w_q'] = (_w(kg, (in_ch, out_ch)) * scale).astype(MXU_DTYPE)
        wk = _w(kg, (ctx_dim, out_ch))
        wv = _w(kg, (ctx_dim, out_ch))
        p['w_kv'] = jnp.concatenate([wk, wv], axis=1).astype(MXU_DTYPE)
    return p


def init_attention_block(kg, channels, time_dim, ctx_dim, head_dim, expansion):
    hidden = expansion * channels
    return {'in_norm': init_cgn(kg, channels, time_dim),
            'attn': init_attention(kg, channels, channels, ctx_dim, head_dim),
            'out_norm': init_cgn(kg, channels, time_dim),
            'ff_w1': _w(kg, (channels, hidden), dtype=MXU_DTYPE),
            'ff_w2': _w(kg, (hidden, channels), dtype=MXU_DTYPE)}


def init_block(kg, in_ch, out_ch, time_dim, kernel_size, down):
    p = {'norm': init_cgn(kg, in_ch, time_dim)}
    if kernel_size == 1:
        p['proj_w'] = _w(kg, (in_ch, out_ch), dtype=MXU_DTYPE)
    else:
        p['proj_w'] = _w(kg, (3, 3, in_ch, out_ch), dtype=MXU_DTYPE)
    p['proj_b'] = _w(kg, (out_ch,))
    if down:
        p['down_w'] = _w(kg, (2, 2, out_ch, out_ch), dtype=MXU_DTYPE)
        p['down_b'] = _w(kg, (out_ch,))
    return p


def init_resnet(kg, in_ch, out_ch, time_dim, compression, up_resolutions):
    hidden = max(in_ch, out_ch) // compression
    chans = [(in_ch, hidden), (hidden, hidden), (hidden, hidden), (hidden, out_ch)]
    ks = [1, 3, 3, 1]
    p = {'blocks': [init_block(kg, ci, co, time_dim, k, up is False)
                    for (ci, co), k, up in zip(chans, ks, up_resolutions)],
         'kernel_sizes': ks,
         'up_resolutions': list(up_resolutions)}
    if in_ch != out_ch:
        p['short_proj_w'] = _w(kg, (in_ch, out_ch), dtype=MXU_DTYPE)
        p['short_proj_b'] = _w(kg, (out_ch,))
    if False in up_resolutions:
        p['short_down_w'] = _w(kg, (2, 2, out_ch, out_ch), dtype=MXU_DTYPE)
        p['short_down_b'] = _w(kg, (out_ch,))
    return p


def init_downsample_block(kg, in_ch, out_ch, time_dim, ctx_dim, num_blocks,
                          groups, head_dim, expansion, compression,
                          down_sample, self_attention):
    p = {'self_attn': (init_attention_block(kg, in_ch, time_dim, None,
                                            head_dim, expansion)
                       if self_attention else None)}
    up_res_list = ([[None] * 4] * (num_blocks - 1)
                   + [[None, None, False if down_sample else None, None]])
    hidden_channels = [(in_ch, out_ch)] + [(out_ch, out_ch)] * (num_blocks - 1)
    pairs = []
    for (ci, co), up_res in zip(hidden_channels, up_res_list):
        pairs.append({
            'in_res': init_resnet(kg, ci, co, time_dim, compression, [None] * 4),
            'attn': (init_attention_block(kg, co, time_dim, ctx_dim,
                                          head_dim, expansion)
                     if ctx_dim is not None else None),
            'out_res': init_resnet(kg, co, co, time_dim, compression, up_res),
        })
    p['pairs'] = pairs
    return p


# ----------------------------------- main --------------------------------------

if __name__ == "__main__":
    cfg = dict(in_channels=32, out_channels=64, time_embed_dim=32,
               context_dim=32, num_blocks=2, groups=4, head_dim=16,
               expansion_ratio=4, compression_ratio=2,
               down_sample=True, self_attention=True)

    kg = KeyGen(0)
    params = init_downsample_block(
        kg, cfg['in_channels'], cfg['out_channels'], cfg['time_embed_dim'],
        cfg['context_dim'], cfg['num_blocks'], cfg['groups'], cfg['head_dim'],
        cfg['expansion_ratio'], cfg['compression_ratio'],
        cfg['down_sample'], cfg['self_attention'])

    dkey = jax.random.PRNGKey(0)
    k1, k2, k3 = jax.random.split(dkey, 3)
    x_nchw = jax.random.normal(k1, (2, cfg['in_channels'], 16, 16), jnp.float32)
    time_embed = jax.random.normal(k2, (2, cfg['time_embed_dim']), jnp.float32)
    context = jax.random.normal(k3, (2, 8, cfg['context_dim']), jnp.float32)

    # NCHW (PyTorch convention) -> NHWC (kernel layout)
    x_nhwc = jnp.transpose(x_nchw, (0, 2, 3, 1))
    run_cfg = {'groups': cfg['groups'], 'head_dim': cfg['head_dim']}
    out_nhwc = downsample_block_fwd(params, x_nhwc, time_embed, context, run_cfg)
    out_nchw = jnp.transpose(out_nhwc, (0, 3, 1, 2))
    jax.block_until_ready(out_nchw)

    assert out_nchw.shape == (2, cfg['out_channels'], 8, 8), out_nchw.shape
    assert bool(jnp.all(jnp.isfinite(out_nchw)))
    print("KERNEL_OK")
</pallas_src>

<mosaic_0001>
module attributes {stable_mosaic.version = 11 : i64} {
  func.func @_silu_kernel(%arg0: memref<2x32xf32, #tpu.memory_space<vmem>>, %arg1: memref<2x32xf32, #tpu.memory_space<vmem>>) attributes {dimension_semantics = [], scalar_prefetch = 0 : i64, scratch_operands = 0 : i64, tpu.core_type = #tpu.core_type<tc>} {
    %c0 = arith.constant 0 : index
    %c0_0 = arith.constant 0 : index
    %0 = vector.load %arg0[%c0, %c0_0] : memref<2x32xf32, #tpu.memory_space<vmem>>, vector<2x32xf32>
    %1 = arith.negf %0 : vector<2x32xf32>
    %2 = math.exp %1 : vector<2x32xf32>
    %cst = arith.constant 1.000000e+00 : f32
    %3 = vector.broadcast %cst : f32 to vector<2x32xf32>
    %4 = arith.addf %3, %2 : vector<2x32xf32>
    %5 = arith.divf %3, %4 : vector<2x32xf32>
    %6 = arith.mulf %0, %5 : vector<2x32xf32>
    %c0_1 = arith.constant 0 : index
    %c0_2 = arith.constant 0 : index
    %7 = vector.load %arg1[%c0_1, %c0_2] : memref<2x32xf32, #tpu.memory_space<vmem>>, vector<2x32xf32>
    tpu.vector_store %arg1[%c0_1, %c0_2], %6 {strides = array<i32>} : memref<2x32xf32, #tpu.memory_space<vmem>>, vector<2x32xf32>,
    return
  }
}

</mosaic_0001>

<bundles_post_ra>
// kernel: tpu_custom_call.1
= control target key start
LH: loop header
LB: loop body
LE: loop exit
PB: predicated region body
PF: predicated region fallthrough
CT: control target
= control target key end

     0   :  { %6 = vsyncpa [#allocation3], 0  ;;  %s137_s0 = inlined_call_operand.hbm [shape: f32[2,32], index: 0, kind: input, shape index: {}]   ;;  %s138_s1 = inlined_call_operand.hbm [shape: f32[2,32], index: 1, kind: output, shape index: {}]  }
   0x1   :  { %7 = vsyncpa [#allocation4], 0  ;;  %s101_s6 = smov [#allocation2]   ;;  %s53_s10 = scalar_lea.hbm %s137_s0, 32 }
   0x2   :  { %s14_s7 = sshll.u32 %s101_s6, 4  ;;  %p54_p0 = scmp.ne.s32.totalorder %s137_s0, %s53_s10  ;;  %s15_s7 = int_to_ptr.vmem [resolvable:$true] %s14_s7 }
   0x3   :  { %p57_p1 = scmp.lt.u32.totalorder %s53_s10, %s137_s0 }
   0x5   :  { %p59_p2 = pnand %p57_p1, %p54_p0 }
   0x7   :  { %62 = shalt.err (!%p59_p2)
}
   0x8   :  { %s63_s15 = scalar_lea.vmem %s15_s7, 32  ;;  %p68_p4 = scmp.lt.s32.totalorder %s15_s7, %s15_s7 }
   0x9   :  { %p64_p3 = scmp.ne.s32.totalorder %s15_s7, %s63_s15  ;;  %p69_p5 = scmp.lt.s32.totalorder %s63_s15, %s63_s15 }
   0xb   :  { %p70_p6 = por %p69_p5, %p68_p4 }
   0xd   :  { %p71_p7 = pnand %p70_p6, %p64_p3 }
   0xf   :  { %74 = shalt.err (!%p71_p7)
}
  0x10   :  { %17 = dma.hbm_to_vmem [thread:$0]  %s137_s0, 32, %s15_s7, [#allocation3]  }
  0x11   :  { %97 = dma.done.wait [#allocation3], 32  }
  0x12   :  { %98 = vsyncadd [#allocation3], 4294967264  ;;  %v21_v0 = vld [vmem:[#allocation2] sm:$0x3]  ;;  %s102_s18 = smov [#allocation5]   ;;  %vm29_vm0 = vcmask 254976  }
  0x13   :  { %v46_v1 = vmul.f32 -1.442695, %v21_v0  ;;  %s37_s19 = sshll.u32 %s102_s18, 4  ;;  %s38_s19 = int_to_ptr.vmem [resolvable:$true] %s37_s19 }
  0x14   :  { %s75_s20 = scalar_lea.vmem %s38_s19, 32  ;;  %p80_p9 = scmp.lt.s32.totalorder %s38_s19, %s38_s19 }
  0x15   :  { %49 = vpow2.f32 %v46_v1  ;;  %p76_p8 = scmp.ne.s32.totalorder %s38_s19, %s75_s20  ;;  %p81_p10 = scmp.lt.s32.totalorder %s75_s20, %s75_s20 }
  0x17   :  { %p82_p11 = por %p81_p10, %p80_p9 }
  0x19   :  { %p83_p12 = pnand %p82_p11, %p76_p8 }
  0x1f   :  { %v50_v2 = vpop.eup %49 }
  0x20   :  { %v25_v3 = vadd.f32 1.0, %v50_v2 }
  0x22   :  { %51 = vrcp.f32 %v25_v3 }
  0x2c   :  { %v52_v4 = vpop.eup %51 }
  0x2d   :  { %v28_v5 = vmul.f32 %v52_v4, %v21_v0 }
  0x2f   :  { %30 = vst.msk [vmem:[#allocation5] sm:$0x3] %vm29_vm0, %v28_v5 }
  0x30   :  { %86 = shalt.err (!%p83_p12)
}
  0x31   :  { %s87_s22 = scalar_lea.hbm %s138_s1, 32 }
  0x32   :  { %p88_p13 = scmp.ne.s32.totalorder %s138_s1, %s87_s22  ;;  %p91_p0 = scmp.lt.u32.totalorder %s87_s22, %s138_s1 }
  0x34   :  { %p93_p1 = pnand %p91_p0, %p88_p13 }
  0x36   :  { %96 = shalt.err (!%p93_p1)
}
  0x37   :  { %40 = dma.vmem_to_hbm [thread:$0]  %s38_s19, 32, %s138_s1, [#allocation4]  }
  0x38   :  { %99 = dma.done.wait [#allocation4], 32  }
  0x39   :  { %100 = vsyncadd [#allocation4], 4294967264 }
  0x3a   :  { %44 = vsyncpa [#allocation3], 1 }
  0x3b   :  { %45 = vsyncpa [#allocation4], 1 }

</bundles_post_ra>
